<compile_context>
chip_gen: v7x
topology: tpu7x:2x2x1
jax: 0.10.0
libtpu: 0.0.40
codegen_flags: <defaults>
</compile_context>

<pallas_src>
import functools

import jax
import jax.numpy as jnp
import numpy as np
from jax.experimental import pallas as pl
from jax.experimental.pallas import tpu as pltpu


def _swag_fwd_kernel(x_ref, w1_ref, w2_ref, o_ref, im1_ref, im2_ref):
    """Fused Conv1d(circular)->ReLU->Conv1d(circular) for a block of Bb batch
    elements.

    x_ref  : (Bb, C_in, L)          input block
    w1_ref : (H, K*C_in + 1)        conv1 weights, tap-major, bias folded
    w2_ref : (C_out, K*H + 1)       conv2 weights, tap-major, bias folded
    o_ref  : (Bb, C_out, L)         output block
    im1_ref: (K*C_in + 1, L) VMEM   im2col scratch, layer 1
    im2_ref: (K*H  + 1, L) VMEM     im2col scratch, layer 2
    """
    Bb, C_in, L = x_ref.shape
    H, F1 = w1_ref.shape
    C_out, F2 = w2_ref.shape
    K = (F1 - 1) // C_in
    pad = (K - 1) // 2

    w1 = w1_ref[...]
    w2 = w2_ref[...]

    # Bias rows of the im2col operands (row of ones). Cheap; written per step.
    ones_row = jnp.ones((1, L), jnp.float32)
    im1_ref[F1 - 1:F1, :] = ones_row
    im2_ref[F2 - 1:F2, :] = ones_row

    for bi in range(Bb):  # static unroll over the batch block (Bb is small)
        x = x_ref[bi]  # (C_in, L)

        # ---- layer 1: circular conv == K lane rotations + ONE fused matmul ----
        # im1[k*C_in + c, l] = x[c, (l + k - pad) mod L]
        for k in range(K):
            shifted = x if k == pad else pltpu.roll(x, shift=(pad - k) % L, axis=1)
            im1_ref[k * C_in:(k + 1) * C_in, :] = shifted
        y1 = jnp.maximum(
            jnp.dot(w1, im1_ref[...], preferred_element_type=jnp.float32), 0.0
        )  # (H, L)

        # ---- layer 2 ----
        for k in range(K):
            shifted = y1 if k == pad else pltpu.roll(y1, shift=(pad - k) % L, axis=1)
            im2_ref[k * H:(k + 1) * H, :] = shifted
        y2 = jnp.dot(w2, im2_ref[...], preferred_element_type=jnp.float32)  # (C_out, L)

        o_ref[bi] = y2.astype(o_ref.dtype)


def _pick_block_batch(B, cap=32):
    """Batch elements per grid step: pack batch, but keep >=2 grid blocks when
    possible (v7x has 2 TensorCores) and cap the block (VMEM budget, 64 MiB on
    v7x)."""
    if B <= 1:
        return 1
    bb = min(cap, B // 2)
    while bb > 1 and B % bb != 0:
        bb -= 1
    return max(bb, 1)


@functools.partial(jax.jit, static_argnums=())
def swag_forward(x, w1, b1, w2, b2):
    """SwagNN.forward == base.forward.  x: (B, C_in, L) float32, NCL layout."""
    B, C_in, L = x.shape
    H, _, K = w1.shape
    C_out = w2.shape[0]

    bb = _pick_block_batch(B)
    grid = B // bb
    F1 = K * C_in + 1
    F2 = K * H + 1

    # Glue (once, outside the kernel): tap-major weight im2col + fold bias as
    # the last column (matches the "ones" row of the in-kernel im2col operand).
    w1_aug = jnp.concatenate(
        [jnp.transpose(w1, (0, 2, 1)).reshape(H, K * C_in), b1[:, None]], axis=1
    )  # (H, F1)
    w2_aug = jnp.concatenate(
        [jnp.transpose(w2, (0, 2, 1)).reshape(C_out, K * H), b2[:, None]], axis=1
    )  # (C_out, F2)

    flops = 2 * B * L * (H * F1 + C_out * F2)
    bytes_accessed = 4 * (B * C_in * L + H * F1 + C_out * F2 + B * C_out * L)

    return pl.pallas_call(
        _swag_fwd_kernel,
        out_shape=jax.ShapeDtypeStruct((B, C_out, L), x.dtype),
        grid_spec=pltpu.PrefetchScalarGridSpec(
            num_scalar_prefetch=0,
            grid=(grid,),
            in_specs=[
                pl.BlockSpec((bb, C_in, L), lambda b: (b, 0, 0)),
                pl.BlockSpec((H, F1), lambda b: (0, 0)),
                pl.BlockSpec((C_out, F2), lambda b: (0, 0)),
            ],
            out_specs=pl.BlockSpec((bb, C_out, L), lambda b: (b, 0, 0)),
            scratch_shapes=[
                pltpu.VMEM((F1, L), jnp.float32),
                pltpu.VMEM((F2, L), jnp.float32),
            ],
        ),
        compiler_params=pltpu.CompilerParams(
            dimension_semantics=("parallel",),
        ),
        cost_estimate=pl.CostEstimate(
            flops=flops, transcendentals=0, bytes_accessed=bytes_accessed
        ),
    )(x, w1_aug, w2_aug)


def ref_forward(x, w1, b1, w2, b2):
    """Pure-JAX reference mirroring torch Conv1d(circular) -> ReLU -> Conv1d."""
    K = w1.shape[-1]
    pad = (K - 1) // 2

    def conv1d_circ(h, w, b):
        hp = jnp.pad(h, ((0, 0), (0, 0), (pad, pad)), mode="wrap")
        y = jax.lax.conv_general_dilated(
            hp, w, window_strides=(1,), padding="VALID",
            dimension_numbers=("NCH", "OIH", "NCH"),
        )
        return y + b[None, :, None]

    y1 = jnp.maximum(conv1d_circ(x, w1, b1), 0.0)
    return conv1d_circ(y1, w2, b2)


if __name__ == "__main__":
    # Small shapes consistent with a 1D-KS surrogate: batch=2, 4 input fields,
    # 128 spatial points (lane-exact), 32 hidden channels, kernel width 5.
    B, C_in, L = 2, 4, 128
    H, C_out, K = 32, 4, 5

    key = jax.random.PRNGKey(0)
    kx, kw1, kb1, kw2, kb2 = jax.random.split(key, 5)

    x = jax.random.normal(kx, (B, C_in, L), jnp.float32)

    # Deterministic PyTorch-style uniform init (bound = 1/sqrt(fan_in)).
    bound1 = 1.0 / np.sqrt(C_in * K)
    bound2 = 1.0 / np.sqrt(H * K)
    w1 = jax.random.uniform(kw1, (H, C_in, K), jnp.float32, -bound1, bound1)
    b1 = jax.random.uniform(kb1, (H,), jnp.float32, -bound1, bound1)
    w2 = jax.random.uniform(kw2, (C_out, H, K), jnp.float32, -bound2, bound2)
    b2 = jax.random.uniform(kb2, (C_out,), jnp.float32, -bound2, bound2)

    out = swag_forward(x, w1, b1, w2, b2)
    out = jax.block_until_ready(out)

    ref = jax.block_until_ready(ref_forward(x, w1, b1, w2, b2))
    np.testing.assert_allclose(np.asarray(out), np.asarray(ref),
                               rtol=1e-4, atol=1e-4)
    print("KERNEL_OK")
</pallas_src>

<mosaic_0001>
module attributes {stable_mosaic.version = 11 : i64} {
  func.func @_swag_fwd_kernel(%arg0: i32, %arg1: memref<1x4x128xf32, #tpu.memory_space<vmem>>, %arg2: memref<32x21xf32, #tpu.memory_space<vmem>>, %arg3: memref<4x161xf32, #tpu.memory_space<vmem>>, %arg4: memref<1x4x128xf32, #tpu.memory_space<vmem>>, %arg5: memref<21x128xf32, #tpu.memory_space<vmem>>, %arg6: memref<161x128xf32, #tpu.memory_space<vmem>>) attributes {dimension_semantics = [#tpu.dimension_semantics<parallel>], iteration_bounds = array<i64: 2>, scalar_prefetch = 0 : i64, scratch_operands = 2 : i64, tpu.core_type = #tpu.core_type<tc>, window_params = [{transform_indices = @transform_0, window_bounds = array<i64: 1, 4, 128>}, {pipeline_mode = #tpu.pipeline_mode<synchronous>, transform_indices = @transform_1, window_bounds = array<i64: 32, 21>}, {pipeline_mode = #tpu.pipeline_mode<synchronous>, transform_indices = @transform_2, window_bounds = array<i64: 4, 161>}, {transform_indices = @transform_3, window_bounds = array<i64: 1, 4, 128>}]} {
    %c0 = arith.constant 0 : index
    %c0_0 = arith.constant 0 : index
    %0 = vector.load %arg2[%c0, %c0_0] : memref<32x21xf32, #tpu.memory_space<vmem>>, vector<32x21xf32>
    %c0_1 = arith.constant 0 : index
    %c0_2 = arith.constant 0 : index
    %1 = vector.load %arg3[%c0_1, %c0_2] : memref<4x161xf32, #tpu.memory_space<vmem>>, vector<4x161xf32>
    %cst = arith.constant 1.000000e+00 : f32
    %2 = vector.broadcast %cst : f32 to vector<1x128xf32>
    %c20 = arith.constant 20 : index
    %c0_3 = arith.constant 0 : index
    %3 = vector.load %arg5[%c20, %c0_3] : memref<21x128xf32, #tpu.memory_space<vmem>>, vector<1x128xf32>
    tpu.vector_store %arg5[%c20, %c0_3], %2 {strides = array<i32>} : memref<21x128xf32, #tpu.memory_space<vmem>>, vector<1x128xf32>,
    %c160 = arith.constant 160 : index
    %c0_4 = arith.constant 0 : index
    %4 = vector.load %arg6[%c160, %c0_4] : memref<161x128xf32, #tpu.memory_space<vmem>>, vector<1x128xf32>
    tpu.vector_store %arg6[%c160, %c0_4], %2 {strides = array<i32>} : memref<161x128xf32, #tpu.memory_space<vmem>>, vector<1x128xf32>,
    %c0_5 = arith.constant 0 : index
    %c0_6 = arith.constant 0 : index
    %c0_7 = arith.constant 0 : index
    %5 = vector.load %arg1[%c0_5, %c0_6, %c0_7] : memref<1x4x128xf32, #tpu.memory_space<vmem>>, vector<1x4x128xf32>
    %6 = vector.shape_cast %5 : vector<1x4x128xf32> to vector<4x128xf32>
    %c2_i32 = arith.constant 2 : i32
    %7 = tpu.dynamic_rotate %6 by %c2_i32 dim 1 : vector<4x128xf32>, i32 -> vector<4x128xf32>
    %c0_8 = arith.constant 0 : index
    %c0_9 = arith.constant 0 : index
    %8 = vector.load %arg5[%c0_8, %c0_9] : memref<21x128xf32, #tpu.memory_space<vmem>>, vector<4x128xf32>
    tpu.vector_store %arg5[%c0_8, %c0_9], %7 {strides = array<i32>} : memref<21x128xf32, #tpu.memory_space<vmem>>, vector<4x128xf32>,
    %c1_i32 = arith.constant 1 : i32
    %9 = tpu.dynamic_rotate %6 by %c1_i32 dim 1 : vector<4x128xf32>, i32 -> vector<4x128xf32>
    %c4 = arith.constant 4 : index
    %c0_10 = arith.constant 0 : index
    %10 = vector.load %arg5[%c4, %c0_10] : memref<21x128xf32, #tpu.memory_space<vmem>>, vector<4x128xf32>
    tpu.vector_store %arg5[%c4, %c0_10], %9 {strides = array<i32>} : memref<21x128xf32, #tpu.memory_space<vmem>>, vector<4x128xf32>,
    %c8 = arith.constant 8 : index
    %c0_11 = arith.constant 0 : index
    %11 = vector.load %arg5[%c8, %c0_11] : memref<21x128xf32, #tpu.memory_space<vmem>>, vector<4x128xf32>
    tpu.vector_store %arg5[%c8, %c0_11], %6 {strides = array<i32>} : memref<21x128xf32, #tpu.memory_space<vmem>>, vector<4x128xf32>,
    %c127_i32 = arith.constant 127 : i32
    %12 = tpu.dynamic_rotate %6 by %c127_i32 dim 1 : vector<4x128xf32>, i32 -> vector<4x128xf32>
    %c12 = arith.constant 12 : index
    %c0_12 = arith.constant 0 : index
    %13 = vector.load %arg5[%c12, %c0_12] : memref<21x128xf32, #tpu.memory_space<vmem>>, vector<4x128xf32>
    tpu.vector_store %arg5[%c12, %c0_12], %12 {strides = array<i32>} : memref<21x128xf32, #tpu.memory_space<vmem>>, vector<4x128xf32>,
    %c126_i32 = arith.constant 126 : i32
    %14 = tpu.dynamic_rotate %6 by %c126_i32 dim 1 : vector<4x128xf32>, i32 -> vector<4x128xf32>
    %c16 = arith.constant 16 : index
    %c0_13 = arith.constant 0 : index
    %15 = vector.load %arg5[%c16, %c0_13] : memref<21x128xf32, #tpu.memory_space<vmem>>, vector<4x128xf32>
    tpu.vector_store %arg5[%c16, %c0_13], %14 {strides = array<i32>} : memref<21x128xf32, #tpu.memory_space<vmem>>, vector<4x128xf32>,
    %c0_14 = arith.constant 0 : index
    %c0_15 = arith.constant 0 : index
    %16 = vector.load %arg5[%c0_14, %c0_15] : memref<21x128xf32, #tpu.memory_space<vmem>>, vector<21x128xf32>
    %cst_16 = arith.constant dense<0.000000e+00> : vector<32x128xf32>
    %17 = tpu.matmul %0, %16, %cst_16 {dimension_numbers = #tpu.dot_dimension_numbers<[1], [0], [0], [1], [0, 0, 1, 1], [], []>} : vector<32x21xf32>, vector<21x128xf32>, vector<32x128xf32> -> vector<32x128xf32>
    %cst_17 = arith.constant 0.000000e+00 : f32
    %18 = vector.broadcast %cst_17 : f32 to vector<32x128xf32>
    %19 = arith.maximumf %17, %18 : vector<32x128xf32>
    %c2_i32_18 = arith.constant 2 : i32
    %20 = tpu.dynamic_rotate %19 by %c2_i32_18 dim 1 : vector<32x128xf32>, i32 -> vector<32x128xf32>
    %c0_19 = arith.constant 0 : index
    %c0_20 = arith.constant 0 : index
    %21 = vector.load %arg6[%c0_19, %c0_20] : memref<161x128xf32, #tpu.memory_space<vmem>>, vector<32x128xf32>
    tpu.vector_store %arg6[%c0_19, %c0_20], %20 {strides = array<i32>} : memref<161x128xf32, #tpu.memory_space<vmem>>, vector<32x128xf32>,
    %c1_i32_21 = arith.constant 1 : i32
    %22 = tpu.dynamic_rotate %19 by %c1_i32_21 dim 1 : vector<32x128xf32>, i32 -> vector<32x128xf32>
    %c32 = arith.constant 32 : index
    %c0_22 = arith.constant 0 : index
    %23 = vector.load %arg6[%c32, %c0_22] : memref<161x128xf32, #tpu.memory_space<vmem>>, vector<32x128xf32>
    tpu.vector_store %arg6[%c32, %c0_22], %22 {strides = array<i32>} : memref<161x128xf32, #tpu.memory_space<vmem>>, vector<32x128xf32>,
    %c64 = arith.constant 64 : index
    %c0_23 = arith.constant 0 : index
    %24 = vector.load %arg6[%c64, %c0_23] : memref<161x128xf32, #tpu.memory_space<vmem>>, vector<32x128xf32>
    tpu.vector_store %arg6[%c64, %c0_23], %19 {strides = array<i32>} : memref<161x128xf32, #tpu.memory_space<vmem>>, vector<32x128xf32>,
    %c127_i32_24 = arith.constant 127 : i32
    %25 = tpu.dynamic_rotate %19 by %c127_i32_24 dim 1 : vector<32x128xf32>, i32 -> vector<32x128xf32>
    %c96 = arith.constant 96 : index
    %c0_25 = arith.constant 0 : index
    %26 = vector.load %arg6[%c96, %c0_25] : memref<161x128xf32, #tpu.memory_space<vmem>>, vector<32x128xf32>
    tpu.vector_store %arg6[%c96, %c0_25], %25 {strides = array<i32>} : memref<161x128xf32, #tpu.memory_space<vmem>>, vector<32x128xf32>,
    %c126_i32_26 = arith.constant 126 : i32
    %27 = tpu.dynamic_rotate %19 by %c126_i32_26 dim 1 : vector<32x128xf32>, i32 -> vector<32x128xf32>
    %c128 = arith.constant 128 : index
    %c0_27 = arith.constant 0 : index
    %28 = vector.load %arg6[%c128, %c0_27] : memref<161x128xf32, #tpu.memory_space<vmem>>, vector<32x128xf32>
    tpu.vector_store %arg6[%c128, %c0_27], %27 {strides = array<i32>} : memref<161x128xf32, #tpu.memory_space<vmem>>, vector<32x128xf32>,
    %c0_28 = arith.constant 0 : index
    %c0_29 = arith.constant 0 : index
    %29 = vector.load %arg6[%c0_28, %c0_29] : memref<161x128xf32, #tpu.memory_space<vmem>>, vector<161x128xf32>
    %cst_30 = arith.constant dense<0.000000e+00> : vector<4x128xf32>
    %30 = tpu.matmul %1, %29, %cst_30 {dimension_numbers = #tpu.dot_dimension_numbers<[1], [0], [0], [1], [0, 0, 1, 1], [], []>} : vector<4x161xf32>, vector<161x128xf32>, vector<4x128xf32> -> vector<4x128xf32>
    %c0_31 = arith.constant 0 : index
    %c0_32 = arith.constant 0 : index
    %c0_33 = arith.constant 0 : index
    %31 = vector.load %arg4[%c0_31, %c0_32, %c0_33] : memref<1x4x128xf32, #tpu.memory_space<vmem>>, vector<1x4x128xf32>
    %32 = vector.shape_cast %31 : vector<1x4x128xf32> to vector<4x128xf32>
    %33 = vector.shape_cast %30 : vector<4x128xf32> to vector<1x4x128xf32>
    tpu.vector_store %arg4[%c0_31, %c0_32, %c0_33], %33 {strides = array<i32>} : memref<1x4x128xf32, #tpu.memory_space<vmem>>, vector<1x4x128xf32>,
    return
  }
  func.func @transform_0(%arg0: i32) -> (i32, i32, i32) {
    %c0_i32 = arith.constant 0 : i32
    %c0_i32_0 = arith.constant 0 : i32
    %c0_i32_1 = arith.constant 0 : i32
    return %arg0, %c0_i32, %c0_i32_0 : i32, i32, i32
  }
  func.func @transform_1(%arg0: i32) -> (i32, i32) {
    %c0_i32 = arith.constant 0 : i32
    %c0_i32_0 = arith.constant 0 : i32
    %c0_i32_1 = arith.constant 0 : i32
    return %c0_i32, %c0_i32_0 : i32, i32
  }
  func.func @transform_2(%arg0: i32) -> (i32, i32) {
    %c0_i32 = arith.constant 0 : i32
    %c0_i32_0 = arith.constant 0 : i32
    %c0_i32_1 = arith.constant 0 : i32
    return %c0_i32, %c0_i32_0 : i32, i32
  }
  func.func @transform_3(%arg0: i32) -> (i32, i32, i32) {
    %c0_i32 = arith.constant 0 : i32
    %c0_i32_0 = arith.constant 0 : i32
    %c0_i32_1 = arith.constant 0 : i32
    return %arg0, %c0_i32, %c0_i32_0 : i32, i32, i32
  }
}

</mosaic_0001>

<bundles_post_ra>
// kernel: swag_forward.1
= control target key start
LH: loop header
LB: loop body
LE: loop exit
PB: predicated region body
PF: predicated region fallthrough
CT: control target
= control target key end

     0   :  { %8 = vsyncpa [#allocation5], 0  ;;  %s880_s0 = inlined_call_operand.vmem [shape: f32[2,4,128], index: 0, kind: input, shape index: {}]   ;;  %s881_s1 = inlined_call_operand.vmem [shape: f32[32,21], index: 1, kind: input, shape index: {}]   ;;  %s882_s2 = inlined_call_operand.vmem [shape: f32[4,161], index: 2, kind: input, shape index: {}]   ;;  %s883_s3 = inlined_call_operand.hbm [shape: f32[2,4,128], index: 3, kind: output, shape index: {}]  }
   0x1   :  { %10 = vsyncpa [#allocation5 + $0x1], 0  ;;  %s731_s12 = smov 0   ;;  %s733_s13 = smov 0  }
   0x2   :  { %s735_s14 = smov 0   ;;  %s737_s15 = smov 0  }
   0x3 LB: > { %s752_s16 = sadd.s32 4294967295, %s701_s15   ;;  %s522_s17 = sadd.s32 4294967294, %s701_s15   ;;  %s701_s15 = sphi %s737_s15, %s889_s15   ;;  %s697_s14 = sphi %s735_s14, %s888_s14   ;;  %s693_s13 = sphi %s733_s13, %s887_s13   ;;  %s689_s12 = sphi %s731_s12, %s886_s12  }
   0x4   : > { %s756_s18 = sadd.s32 1, %s701_s15   ;;  %s91_s19 = sadd.s32 1, %s697_s14 }
   0x5   : > { %s88_s20 = ssub.s32 %s701_s15, %s756_s18  ;;  %p101_p0 = scmp.ne.s32.totalorder %s697_s14, %s693_s13 }
   0x6   : > { %p89_p1 = scmp.eq.s32.totalorder %s88_s20, 0  ;;  %p102_p2 = scmp.eq.s32.totalorder %s752_s16, 1 }
   0x7   : > { %p107_p3 = scmp.ne.s32.totalorder %s693_s13, %s689_s12  ;;  %p108_p4 = scmp.eq.s32.totalorder %s522_s17, 1 }
   0x8   : > { %s767_s21 = scalar_select %p89_p1, %s697_s14, %s91_s19  }
   0x9   : > { %p769_p5 = por %p102_p2, %p101_p0  ;;  %p773_p6 = por %p108_p4, %p107_p3 }
   0xa   : > { %p525_p7 = scmp.ge.s32.totalorder %s701_s15, 1  ;;  %p139_p8 = scmp.lt.s32.totalorder %s701_s15, 3 }
   0xc   : > { %p140_p9 = pnand %p525_p7, %p139_p8 }
   0xd   : > { %p162_p10 = scmp.lt.s32.totalorder (!%p140_p9), %s752_s16, 1  ;;  %v703_v0 = vmov (!%p140_p9), 1.0   ;;  %s704_s29 = smov (!%p140_p9), 2   ;;  %v166_v2 = vld [vmem:[%s881_s1] sm:$0xff] (!%p140_p9)  ;;  %vm190_vm0 = vcmask (!%p140_p9), 171008   ;;  %vm203_vm1 = vcmask (!%p140_p9), 1044480  }
   0xe   : > { %143 = sbr.rel (%p140_p9) target bundleno = 760 (0x2f8), region = 32  ;;  %171 = vst [vmem:[#allocation2 + $0x14] sm:$0x1] (!%p140_p9), %v703_v0  ;;  %172 = vst [vmem:[#allocation3 + $0xa0] sm:$0x1] (!%p140_p9), %v703_v0  ;;  %s705_s30 = smov (!%p140_p9), 127   ;;  %552 = vmatprep.mubr.msk.f32.mxu0 (!%p140_p9), %vm190_vm0, %v166_v2 }
   0xf   : > { %s706_s4 = smov (!%p140_p9), 1   ;;  %s707_s5 = smov (!%p140_p9), 126   ;;  %v167_v11 = vld [vmem:[%s881_s1 + $0x8] sm:$0xff] (!%p140_p9)  ;;  %v168_v12 = vld [vmem:[%s881_s1 + $0x10] sm:$0xff] (!%p140_p9)  ;;  %v169_v13 = vld [vmem:[%s881_s1 + $0x18] sm:$0xff] (!%p140_p9)  ;;  %v708_v14 = vmov (!%p140_p9), 0.0|0.0  }
  0x10   : > { %562 = vmatprep.subr.bf16.mxu1 (!%p140_p9), %v708_v14  ;;  %v170_v25 = vld [vmem:[%s882_s2] sm:$0xff] (!%p140_p9)  ;;  %vm371_vm2 = vcmask (!%p140_p9), 269312   ;;  %v709_v51 = vmov (!%p140_p9), 0.0   ;;  %vm374_vm3 = vcmask (!%p140_p9), 1040384  }
  0x11   : > { %v370_v26 = vcombine.high (!%p140_p9), %v170_v25, %v170_v25 }
  0x13   : > { %534 = vmatprep.mubr.msk.f32.mxu1 (!%p140_p9), %vm371_vm2, %v370_v26 }
  0x15   : > { %s163_s24 = scalar_select %p162_p10, %s752_s16, 1  ;;  %v368_v52 = vld [vmem:[#allocation3 + $0xa0] sm:$0x1] }
  0x17   : > { %s527_s25 = sshll.u32 %s163_s24, 2 }
  0x18   : > { %s165_s28 = scalar_lea.vmem %s880_s0, %s527_s25  ;;  %s159_s25 = sand.u32 1, %s693_s13  }
  0x19   : > { %v173_v1 = vld [vmem:[%s165_s28] sm:$0xf]  ;;  %s526_s26 = sshll.u32 %s159_s25, 2  ;;  %s450_s6 = scalar_lea.sflag [#allocation5], %s159_s25 }
  0x1a   : > { %174 = vrot.lane.b32.xlu0 %v173_v1, %s704_s29  ;;  %180 = vst [vmem:[#allocation2 + $0x8] sm:$0xf] %v173_v1  ;;  %181 = vrot.lane.b32.xlu1 %v173_v1, %s705_s30  ;;  %s161_s27 = scalar_lea.vmem [#allocation4], %s526_s26 }
  0x1b   : > { %s463_s28 = sshll.u32 %s161_s27, 4  ;;  %s835_s28 = int_to_ptr.vmem [resolvable:$true] %s463_s28 }
  0x1c   : > { %s639_s7 = scalar_lea.vmem %s835_s28, 64 }
  0x1d   : > { %p640_p11 = scmp.ne.s32.totalorder %s835_s28, %s639_s7 }
  0x1e   : > { %177 = vrot.lane.b32.xlu0 %v173_v1, %s706_s4  ;;  %184 = vrot.lane.b32.xlu1 %v173_v1, %s707_s5 }
  0x1f   : > { %p641_p12 = pnand %p640_p11, %p769_p5 }
  0x21   : > { %p642_p13 = pneg %p641_p12 }
  0x8c   : > { %v175_v3 = vpop.permute.xlu0 %174  ;;  %v182_v4 = vpop.permute.xlu1 %181 }
  0x8d   : > { %176 = vst [vmem:[#allocation2] sm:$0xf] %v175_v3  ;;  %183 = vst [vmem:[#allocation2 + $0xc] sm:$0xf] %v182_v4 }
  0x90   : > { %v178_v5 = vpop.permute.xlu0 %177  ;;  %v185_v6 = vpop.permute.xlu1 %184 }
  0x91   : > { %179 = vst [vmem:[#allocation2 + $0x4] sm:$0xf] %v178_v5  ;;  %186 = vst [vmem:[#allocation2 + $0x10] sm:$0xf] %v185_v6 }
  0x94   : > { %v188_v7 = vld [vmem:[#allocation2 + $0x8] sm:$0xff] }
  0x98   : > { %v187_v8 = vld [vmem:[#allocation2] sm:$0xff]  ;;  %v189_v10 = vld [vmem:[#allocation2 + $0x10] sm:$0x1f] }
  0x99   : > { %v558_v9 = vpack.c.bf16 %v188_v7, %v187_v8 }
  0x9b   : > { %559 = vmatprep.subr.bf16.mxu0 %v558_v9 }
  0x9c   : > { %561 = vmatpush3.bf16.msra.mxu0 %v558_v9 }
  0x9d   : > { %550 = vmatprep.subr.msk.mxu0 %vm203_vm1, %v189_v10 }
  0xa0   : > { %551 = vmatpush3.msk.msra.mxu0 %vm203_vm1, %v189_v10 }
  0xa1   : > { %553 = vmatmul.mubr.msk.f32.vlgmr.msra.gmra.mrb[0].mxu0 %vm190_vm0, %v167_v11 }
  0xa2   : > { %555 = vmatprep.mubr.msk.f32.mxu0 %vm190_vm0, %v168_v12 }
  0xa5   : > { %556 = vmatmul.mubr.msk.f32.gmra.mrb[2].mxu0 %vm190_vm0, %v169_v13 }
 0x174   : > { %v554_v15 = vpop.f32.mrb[0].mxu0 }
 0x175   : > { %v293_v16 = vmax.f32 %v554_v15, 0.0  ;;  %v273_v17 = vpop.f32.mrb[1].mxu0 }
 0x176   : > { %v292_v18 = vmax.f32 %v273_v17, 0.0 }
 0x177   : > { %298 = vrot.lane.b32.xlu1 %v293_v16, %s704_s29 }
 0x178   : > { %296 = vrot.lane.b32.xlu0 %v292_v18, %s704_s29  ;;  %v557_v19 = vpop.f32.mrb[2].mxu0  ;;  %v575_v20 = vpack.c.bf16 %v293_v16, %v292_v18 }
 0x179   : > { %v295_v21 = vmax.f32 %v557_v19, 0.0  ;;  %v283_v22 = vpop.f32.mrb[3].mxu0 }
 0x17a   : > { %v294_v23 = vmax.f32 %v283_v22, 0.0 }
 0x17b   : > { %302 = vrot.lane.b32.xlu1 %v295_v21, %s704_s29 }
 0x17c   : > { %300 = vrot.lane.b32.xlu0 %v294_v23, %s704_s29  ;;  %v578_v24 = vpack.c.bf16 %v295_v21, %v294_v23  ;;  %s536_s29 = sshll.u32 %s752_s16, 6  ;;  %s710_s16 = smov [#allocation4]  }
 0x17d   : > { %s643_s8 = sshll.u32 %s710_s16, 4  ;;  %s644_s8 = int_to_ptr.vmem [resolvable:$false] %s643_s8 }
 0x17e   : > { %s645_s9 = scalar_lea.vmem %s644_s8, 128  ;;  %p646_p0 = scmp.lt.s32.totalorder %s835_s28, %s644_s8 }
 0x17f   : > { %310 = vrot.lane.b32.xlu1 %v293_v16, %s706_s4  ;;  %p647_p1 = scmp.lt.s32.totalorder %s645_s9, %s639_s7 }
 0x180   : > { %308 = vrot.lane.b32.xlu0 %v292_v18, %s706_s4 }
 0x181   : > { %p648_p2 = por %p647_p1, %p646_p0 }
 0x183   : > { %314 = vrot.lane.b32.xlu1 %v295_v21, %s706_s4  ;;  %p649_p3 = pnand %p648_p2, %p642_p13 }
 0x184   : > { %312 = vrot.lane.b32.xlu0 %v294_v23, %s706_s4 }
 0x187   : > { %326 = vrot.lane.b32.xlu1 %v293_v16, %s705_s30 }
 0x188   : > { %324 = vrot.lane.b32.xlu0 %v292_v18, %s705_s30 }
 0x18b   : > { %330 = vrot.lane.b32.xlu1 %v295_v21, %s705_s30 }
 0x18c   : > { %328 = vrot.lane.b32.xlu0 %v294_v23, %s705_s30 }
 0x18f   : > { %338 = vrot.lane.b32.xlu1 %v293_v16, %s707_s5 }
 0x190   : > { %336 = vrot.lane.b32.xlu0 %v292_v18, %s707_s5 }
 0x193   : > { %342 = vrot.lane.b32.xlu1 %v295_v21, %s707_s5 }
 0x194   : > { %340 = vrot.lane.b32.xlu0 %v294_v23, %s707_s5  ;;  %s840_s5 = scalar_lea.hbm %s883_s3, %s536_s29 }
 0x1e9   : > { %v299_v27 = vpop.permute.xlu1 %298 }
 0x1ea   : > { %v297_v28 = vpop.permute.xlu0 %296 }
 0x1eb   : > { %v563_v29 = vpack.c.bf16 %v299_v27, %v297_v28 }
 0x1ed   : > { %v303_v30 = vpop.permute.xlu1 %302  ;;  %564 = vmatpush1.bf16.msra.mxu1 %v563_v29 }
 0x1ee   : > { %v301_v31 = vpop.permute.xlu0 %300  ;;  %565 = vmatprep.subr.bf16.mxu1 %v708_v14 }
 0x1ef   : > { %v566_v32 = vpack.c.bf16 %v303_v30, %v301_v31 }
 0x1f1   : > { %v311_v33 = vpop.permute.xlu1 %310  ;;  %567 = vmatpush1.bf16.msra.mxu1 %v566_v32 }
 0x1f2   : > { %v309_v34 = vpop.permute.xlu0 %308  ;;  %568 = vmatprep.subr.bf16.mxu1 %v708_v14 }
 0x1f3   : > { %v569_v35 = vpack.c.bf16 %v311_v33, %v309_v34 }
 0x1f5   : > { %v315_v36 = vpop.permute.xlu1 %314  ;;  %570 = vmatpush1.bf16.msra.mxu1 %v569_v35 }
 0x1f6   : > { %v313_v37 = vpop.permute.xlu0 %312  ;;  %571 = vmatprep.subr.bf16.mxu1 %v708_v14 }
 0x1f7   : > { %v572_v38 = vpack.c.bf16 %v315_v36, %v313_v37 }
 0x1f9   : > { %v327_v39 = vpop.permute.xlu1 %326  ;;  %573 = vmatpush1.bf16.msra.mxu1 %v572_v38 }
 0x1fa   : > { %v325_v40 = vpop.permute.xlu0 %324  ;;  %574 = vmatprep.subr.bf16.mxu1 %v708_v14 }
 0x1fb   : > { %v581_v45 = vpack.c.bf16 %v327_v39, %v325_v40 }
 0x1fd   : > { %v331_v41 = vpop.permute.xlu1 %330  ;;  %576 = vmatpush1.bf16.msra.mxu1 %v575_v20 }
 0x1fe   : > { %v329_v42 = vpop.permute.xlu0 %328  ;;  %577 = vmatprep.subr.bf16.mxu1 %v708_v14 }
 0x1ff   : > { %v584_v48 = vpack.c.bf16 %v331_v41, %v329_v42 }
 0x201   : > { %v339_v43 = vpop.permute.xlu1 %338  ;;  %579 = vmatpush1.bf16.msra.mxu1 %v578_v24 }
 0x202   : > { %v337_v44 = vpop.permute.xlu0 %336  ;;  %580 = vmatprep.subr.bf16.mxu1 %v708_v14 }
 0x203   : > { %v587_v49 = vpack.c.bf16 %v339_v43, %v337_v44 }
 0x205   : > { %v343_v46 = vpop.permute.xlu1 %342  ;;  %582 = vmatpush1.bf16.msra.mxu1 %v581_v45 }
 0x206   : > { %v341_v47 = vpop.permute.xlu0 %340  ;;  %583 = vmatprep.subr.bf16.mxu1 %v708_v14 }
 0x207   : > { %v590_v50 = vpack.c.bf16 %v343_v46, %v341_v47 }
 0x209   : > { %585 = vmatpush1.bf16.msra.mxu1 %v584_v48 }
 0x20a   : > { %586 = vmatprep.subr.bf16.mxu1 %v708_v14 }
 0x20d   : > { %588 = vmatpush1.bf16.msra.mxu1 %v587_v49 }
 0x20e   : > { %589 = vmatprep.subr.bf16.mxu1 %v708_v14 }
 0x211   : > { %591 = vmatpush1.bf16.msra.mxu1 %v590_v50 }
 0x212   : > { %418 = vmatprep.subr.mxu1 %v709_v51 }
 0x215   : > { %533 = vmatpush1.msk.msra.mxu1 %vm374_vm3, %v368_v52 }
 0x216   : > { %443 = vmatmul.mubr.f32.vlgmr.msra.gmra.mrb[0].mxu1 %v170_v25 }
 0x2e9   : > { %v444_v53 = vpop.f32.mrb[0].mxu1 }
 0x2ea   : > { %448 = vst [vmem:[%s161_s27] sm:$0xf] %v444_v53  ;;  %v446_v54 = vpop.f32.mrb[1].mxu1 }
 0x2eb   : > { %652 = shalt.err (!%p649_p3)
}
 0x2ec   : > { %s653_s10 = scalar_lea.hbm %s840_s5, 64  ;;  %s657_s19 = scalar_lea.hbm %s883_s3, 128 }
 0x2ed   : > { %p654_p4 = scmp.ne.s32.totalorder %s840_s5, %s653_s10  ;;  %p658_p9 = scmp.lt.u32.totalorder %s840_s5, %s883_s3 }
 0x2ee   : > { %p659_p10 = scmp.lt.u32.totalorder %s657_s19, %s653_s10  ;;  %p661_p12 = scmp.lt.u32.totalorder %s653_s10, %s840_s5 }
 0x2ef   : > { %p655_p7 = pnand %p654_p4, %p769_p5 }
 0x2f0   : > { %p660_p11 = por %p659_p10, %p658_p9 }
 0x2f1   : > { %p656_p8 = pneg %p655_p7 }
 0x2f2   : > { %p662_p13 = por %p661_p12, %p660_p11 }
 0x2f4   : > { %p663_p0 = pnand %p662_p13, %p656_p8 }
 0x2f6   : > { %666 = shalt.err (!%p663_p0)
}
 0x2f7   : > { %592 = dma.vmem_to_hbm [thread:$0]  (%p769_p5), %s835_s28, 64, %s840_s5, %s450_s6  }
 0x2f8 PF: > { %p598_p1 = scmp.ge.s32.totalorder %s701_s15, 2  ;;  %s475_s25 = sand.u32 1, %s689_s12  }
 0x2f9   : > { %s476_s26 = scalar_lea.sflag [#allocation5], %s475_s25 }
 0x2fa   : > { %p595_p2 = pnand %p598_p1, %p773_p6 }
 0x2fc   : > { %684 = dma.done.wait (!%p595_p2), %s476_s26, 64  }
 0x2fd   : > { %686 = vsyncadd (!%p595_p2), %s476_s26, 4294967232  ;;  %p13_p3 = scmp.ge.s32.totalorder %s756_s18, 4   ;;  %s886_s12 = smov %s693_s13 }
 0x2fe   : > { %s887_s13 = smov %s697_s14  ;;  %s888_s14 = smov %s767_s21 }
 0x2ff   : > { %s889_s15 = smov %s756_s18  ;;  %15 = sbr.rel (!%p13_p3) target bundleno = 3 (0x3), region = 67 }
 0x306   :  { %481 = vsyncpa [#allocation5], 1 }
 0x307   :  { %483 = vsyncpa [#allocation5 + $0x1], 1 }

</bundles_post_ra>
